<compile_context>
chip_gen: v7x
topology: tpu7x:2x2x1
jax: 0.10.0
libtpu: 0.0.40
codegen_flags: <defaults>
</compile_context>

<pallas_src>
import functools

import jax
import jax.numpy as jnp
from jax.experimental import pallas as pl
from jax.experimental.pallas import tpu as pltpu

GROUPS = 32
EPS = 1e-6
COMPUTE_DTYPE = jnp.bfloat16  # MXU operand dtype / h1 storage dtype (f32 accumulation)


# ----------------------------------------------------------------------------
# Tile-size selection (generation-aware VMEM budget + explicit scoped limit)
# ----------------------------------------------------------------------------
def _vmem_budget_and_limit():
    """(live-buffer budget for tile picking, scoped-VMEM limit we request)."""
    try:
        cap = pltpu.get_tpu_info().vmem_capacity_bytes
    except Exception:
        cap = 64 * 1024 * 1024
    budget = min(cap // 4, 24 * 1024 * 1024)   # v7x: 16 MiB, v5e/v6e: 24 MiB
    limit = min(cap // 2, 2 * budget)          # headroom for double-buffering
    return budget, limit


def _conv_tile_bytes(th, W, cin, cout, cres, in_b, out_b):
    b = 2 * th * W * cin * in_b                   # input tile (double-buffered)
    b += 2 * 2 * W * cin * in_b                   # two 1-row halo blocks (dbl-buffered)
    b += 2 * th * W * cout * out_b                # output tile (double-buffered)
    b += 2 * th * W * cres * 4                    # fused residual input tile
    b += (th + 2) * (W + 2) * cin * 2             # bf16 padded scratch
    b += (th + 2) * (W + 2) * cin * 2             # bf16 prologue temporary (live value)
    b += th * W * 3 * cin * 2                     # lane-concat LHS temporary (live value)
    b += th * W * cout * 4                        # f32 accumulator (live value)
    b += 2 * (9 * cin * cout + cres * cout) * 2   # bf16 weights (assume double-buffered)
    b += 8 * max(cin, cout) * 4                   # scale / shift / bias blocks
    return b


def _pick_tile_h(H, W, convs, budget):
    """Largest row-tile height (a divisor of H) whose live buffers fit `budget`."""
    def fits(th):
        return all(_conv_tile_bytes(th, W, *c) <= budget for c in convs)

    divisors = [d for d in range(1, H + 1) if H % d == 0]
    fitting = [d for d in divisors if fits(d)]
    if not fitting:
        return 1
    tiled = [d for d in fitting if H // d >= 2]   # prefer >=2 grid steps per image
    if tiled and max(tiled) >= min(8, H):
        return max(tiled)
    return max(fitting)


# ----------------------------------------------------------------------------
# Kernels
# ----------------------------------------------------------------------------
def _gn_partial_kernel(x_ref, sum_ref, sumsq_ref):
    # x_ref: (1, th, W, C) -> per-tile channel sum / sum-of-squares (f32).
    x = x_ref[0].astype(jnp.float32)
    c = x.shape[-1]
    x2 = x.reshape(-1, c)
    sum_ref[0, 0] = jnp.sum(x2, axis=0, keepdims=True)
    sumsq_ref[0, 0] = jnp.sum(x2 * x2, axis=0, keepdims=True)


def _fused_conv_kernel(*refs, th, W, Cin, Cout, has_res, has_proj, emit_stats, cdt):
    # inputs : scale (1,1,Cin), shift (1,1,Cin), x (1,th,W,Cin),
    #          top (1,1,W,Cin), bot (1,1,W,Cin), w (3,3*Cin,Cout)[cdt], b (1,1,Cout)
    #          [, residue (1,th,W,Cres) [, res_w (Cres,Cout)[cdt], res_b (1,1,Cout)]]
    # outputs: o (1,th,W,Cout) [, gn2 partial sum (1,1,1,Cout), sumsq (1,1,1,Cout)]
    # scratch: xp (th+2, W+2, Cin) in cdt (zero-padded GN+SiLU input tile)
    scale_ref, shift_ref, x_ref, top_ref, bot_ref, w_ref, b_ref = refs[:7]
    rest = list(refs[7:])
    r_ref = rw_ref = rb_ref = None
    if has_res:
        r_ref = rest.pop(0)
        if has_proj:
            rw_ref = rest.pop(0)
            rb_ref = rest.pop(0)
    o_ref = rest.pop(0)
    sum_ref = sumsq_ref = None
    if emit_stats:
        sum_ref = rest.pop(0)
        sumsq_ref = rest.pop(0)
    (xp_ref,) = rest

    i = pl.program_id(1)
    n_tiles = pl.num_programs(1)

    scale = scale_ref[0, 0, :].astype(jnp.float32)   # (Cin,)
    shift = shift_ref[0, 0, :].astype(jnp.float32)

    def gn_silu(v):                                  # (..., Cin) -> f32
        y = v.astype(jnp.float32) * scale + shift
        return y * jax.nn.sigmoid(y)

    # --- GN+SiLU prologue -> zero-column-padded bf16 scratch tile -------------
    main = gn_silu(x_ref[0]).astype(cdt)                              # (th, W, Cin)
    zc = jnp.zeros((th, 1, Cin), cdt)
    xp_ref[1:th + 1, :, :] = jnp.concatenate([zc, main, zc], axis=1)

    top_m = jnp.where(i > 0, 1.0, 0.0)               # zero halo at the image top
    bot_m = jnp.where(i < n_tiles - 1, 1.0, 0.0)     # zero halo at the image bottom
    zr = jnp.zeros((1, Cin), cdt)
    top = (gn_silu(top_ref[0, 0]) * top_m).astype(cdt)                # (W, Cin)
    bot = (gn_silu(bot_ref[0, 0]) * bot_m).astype(cdt)
    xp_ref[0, :, :] = jnp.concatenate([zr, top, zr], axis=0)
    xp_ref[th + 1, :, :] = jnp.concatenate([zr, bot, zr], axis=0)

    # --- 3x3 conv: one K=3*Cin MXU matmul per kernel row (3 matmuls / tile) ---
    acc = jnp.zeros((th * W, Cout), jnp.float32)
    for dy in range(3):
        rows = xp_ref[dy:dy + th, :, :]                               # (th, W+2, Cin) cdt
        lhs = jnp.concatenate([rows[:, dx:dx + W, :] for dx in range(3)],
                              axis=-1).reshape(th * W, 3 * Cin)
        acc = acc + jnp.dot(lhs, w_ref[dy], preferred_element_type=jnp.float32)
    acc = acc + b_ref[0, 0].astype(jnp.float32)

    # --- fused GroupNorm-2 partial statistics (conv1 only) --------------------
    if emit_stats:
        sum_ref[0, 0] = jnp.sum(acc, axis=0, keepdims=True)           # (1, Cout)
        sumsq_ref[0, 0] = jnp.sum(acc * acc, axis=0, keepdims=True)

    # --- fused residual epilogue (conv2 only) ---------------------------------
    if has_res:
        r = r_ref[0]                                                  # (th, W, Cres)
        if has_proj:
            rp = jnp.dot(r.reshape(th * W, r.shape[-1]).astype(cdt), rw_ref[...],
                         preferred_element_type=jnp.float32)
            acc = acc + rp + rb_ref[0, 0].astype(jnp.float32)
        else:
            acc = acc + r.astype(jnp.float32).reshape(th * W, Cout)

    o_ref[0] = acc.reshape(th, W, Cout).astype(o_ref.dtype)


# ----------------------------------------------------------------------------
# Wrappers
# ----------------------------------------------------------------------------
def gn_partial_stats(x, th, *, vmem_limit=None):
    """Per-(image, row-tile) channel sum / sum-of-squares of x (NHWC)."""
    N, H, W, C = x.shape
    assert H % th == 0
    n_tiles = H // th
    return pl.pallas_call(
        _gn_partial_kernel,
        out_shape=(jax.ShapeDtypeStruct((N, n_tiles, 1, C), jnp.float32),
                   jax.ShapeDtypeStruct((N, n_tiles, 1, C), jnp.float32)),
        grid=(N, n_tiles),
        in_specs=[pl.BlockSpec((1, th, W, C), lambda n, i: (n, i, 0, 0))],
        out_specs=(pl.BlockSpec((1, 1, 1, C), lambda n, i: (n, i, 0, 0)),
                   pl.BlockSpec((1, 1, 1, C), lambda n, i: (n, i, 0, 0))),
        compiler_params=pltpu.CompilerParams(
            dimension_semantics=("parallel", "parallel"),
            vmem_limit_bytes=vmem_limit),
    )(x)


def gn_finalize(psum, psumsq, gamma, beta, hw):
    """GroupNorm(32, C) finalize: per-channel (scale, shift), gn(x) = x*scale+shift."""
    N, _, _, C = psum.shape
    assert C % GROUPS == 0, f"GroupNorm(32, C) requires C % 32 == 0, got C={C}"
    cpg = C // GROUPS
    s = psum.reshape(N, -1, C).sum(axis=1)                 # (N, C)
    ss = psumsq.reshape(N, -1, C).sum(axis=1)
    count = jnp.float32(hw * cpg)
    sg = s.reshape(N, GROUPS, cpg).sum(-1)                 # (N, G)
    ssg = ss.reshape(N, GROUPS, cpg).sum(-1)
    mean = sg / count
    var = jnp.maximum(ssg / count - mean * mean, 0.0)      # clamp (cancellation)
    inv = jax.lax.rsqrt(var + EPS)
    mean_c = jnp.repeat(mean, cpg, axis=-1)                # (N, C)
    inv_c = jnp.repeat(inv, cpg, axis=-1)
    scale = inv_c * gamma.astype(jnp.float32)[None, :]
    shift = beta.astype(jnp.float32)[None, :] - mean_c * scale
    return scale.reshape(N, 1, C), shift.reshape(N, 1, C)


def fused_gn_silu_conv3x3(x, scale, shift, w_oihw, b, *, th, out_dtype=None,
                          emit_stats=False, residue=None, res_w_oihw=None,
                          res_b=None, vmem_limit=None):
    """out = conv3x3(silu(x*scale+shift)) [+ residue | 1x1conv(residue)]  (NHWC).

    If emit_stats, also returns per-tile (sum, sumsq) of the conv output for the
    following GroupNorm (so h1 never needs a second HBM pass).
    """
    N, H, W, Cin = x.shape
    Cout = w_oihw.shape[0]
    assert w_oihw.shape == (Cout, Cin, 3, 3)
    assert H % th == 0
    n_tiles = H // th
    out_dtype = x.dtype if out_dtype is None else out_dtype

    # (Cout,Cin,3,3) -> (ky, kx*Cin, Cout): one K=3*Cin matmul per kernel row.
    wk = jnp.transpose(w_oihw, (2, 3, 1, 0)).reshape(3, 3 * Cin, Cout)
    wk = wk.astype(COMPUTE_DTYPE)

    has_res = residue is not None
    has_proj = res_w_oihw is not None
    if has_res and not has_proj:
        assert residue.shape[3] == Cout

    kernel = functools.partial(
        _fused_conv_kernel, th=th, W=W, Cin=Cin, Cout=Cout,
        has_res=has_res, has_proj=has_proj, emit_stats=emit_stats,
        cdt=COMPUTE_DTYPE)

    in_specs = [
        pl.BlockSpec((1, 1, Cin), lambda n, i: (n, 0, 0)),
        pl.BlockSpec((1, 1, Cin), lambda n, i: (n, 0, 0)),
        pl.BlockSpec((1, th, W, Cin), lambda n, i: (n, i, 0, 0)),
        # halo rows: clamped 1-row blocks above/below the tile (zeroed in-kernel
        # at the image border) — only 2 extra rows of DMA per tile, no jnp.pad.
        pl.BlockSpec((1, 1, W, Cin),
                     lambda n, i: (n, jnp.maximum(i * th - 1, 0), 0, 0)),
        pl.BlockSpec((1, 1, W, Cin),
                     lambda n, i: (n, jnp.minimum((i + 1) * th, H - 1), 0, 0)),
        pl.BlockSpec((3, 3 * Cin, Cout), lambda n, i: (0, 0, 0)),
        pl.BlockSpec((1, 1, Cout), lambda n, i: (0, 0, 0)),
    ]
    args = [scale, shift, x, x, x, wk, b.reshape(1, 1, Cout).astype(jnp.float32)]

    flops = 2 * N * H * W * 9 * Cin * Cout
    bytes_accessed = (x.size * x.dtype.itemsize + wk.size * 2
                      + N * H * W * Cout * jnp.dtype(out_dtype).itemsize)

    if has_res:
        Cres = residue.shape[3]
        in_specs.append(pl.BlockSpec((1, th, W, Cres), lambda n, i: (n, i, 0, 0)))
        args.append(residue)
        bytes_accessed += residue.size * residue.dtype.itemsize
        if has_proj:
            rw = jnp.transpose(res_w_oihw[:, :, 0, 0], (1, 0)).astype(COMPUTE_DTYPE)
            in_specs.append(pl.BlockSpec((Cres, Cout), lambda n, i: (0, 0)))
            in_specs.append(pl.BlockSpec((1, 1, Cout), lambda n, i: (0, 0, 0)))
            args += [rw, res_b.reshape(1, 1, Cout).astype(jnp.float32)]
            flops += 2 * N * H * W * Cres * Cout

    o_shape = jax.ShapeDtypeStruct((N, H, W, Cout), out_dtype)
    o_spec = pl.BlockSpec((1, th, W, Cout), lambda n, i: (n, i, 0, 0))
    if emit_stats:
        st_shape = jax.ShapeDtypeStruct((N, n_tiles, 1, Cout), jnp.float32)
        st_spec = pl.BlockSpec((1, 1, 1, Cout), lambda n, i: (n, i, 0, 0))
        out_shape = (o_shape, st_shape, st_shape)
        out_specs = (o_spec, st_spec, st_spec)
    else:
        out_shape = o_shape
        out_specs = o_spec

    return pl.pallas_call(
        kernel,
        out_shape=out_shape,
        grid=(N, n_tiles),
        in_specs=in_specs,
        out_specs=out_specs,
        scratch_shapes=[pltpu.VMEM((th + 2, W + 2, Cin), COMPUTE_DTYPE)],
        compiler_params=pltpu.CompilerParams(
            dimension_semantics=("parallel", "parallel"),
            vmem_limit_bytes=vmem_limit),
        cost_estimate=pl.CostEstimate(
            flops=int(flops),
            transcendentals=int(N * H * W * Cin),
            bytes_accessed=int(bytes_accessed)),
    )(*args)


def residual_block_forward_nhwc(x, params):
    """ResidualBlock.forward with NHWC input/output (preferred entry point)."""
    N, H, W, Cin = x.shape
    Cout = params["conv1_w"].shape[0]
    budget, vmem_limit = _vmem_budget_and_limit()
    xb = x.dtype.itemsize
    cb = jnp.dtype(COMPUTE_DTYPE).itemsize
    convs = [(Cin, Cout, 0, xb, cb),        # conv1: x(f32)  -> h1(bf16)
             (Cout, Cout, Cin, cb, xb)]     # conv2: h1(bf16) -> out(f32) + residual(x)
    th = _pick_tile_h(H, W, convs, budget)

    # GroupNorm 1: Pallas per-tile partial sums + tiny jnp finalize.
    ps1, pss1 = gn_partial_stats(x, th, vmem_limit=vmem_limit)
    s1, sh1 = gn_finalize(ps1, pss1, params["gn1_w"], params["gn1_b"], H * W)

    # conv1: GN1+SiLU prologue fused; GN2 partial stats emitted from the
    # epilogue; h1 stored in bf16 (one HBM write + one read at half the bytes).
    h1, ps2, pss2 = fused_gn_silu_conv3x3(
        x, s1, sh1, params["conv1_w"], params["conv1_b"], th=th,
        out_dtype=COMPUTE_DTYPE, emit_stats=True, vmem_limit=vmem_limit)
    s2, sh2 = gn_finalize(ps2, pss2, params["gn2_w"], params["gn2_b"], H * W)

    # conv2: GN2+SiLU prologue + residual add (identity or 1x1 projection) fused.
    out = fused_gn_silu_conv3x3(
        h1, s2, sh2, params["conv2_w"], params["conv2_b"], th=th,
        out_dtype=x.dtype, residue=x,
        res_w_oihw=params.get("res_w"), res_b=params.get("res_b"),
        vmem_limit=vmem_limit)
    return out


def residual_block_forward(x_nchw, params):
    """NCHW wrapper for PyTorch parity.  Keep NHWC end-to-end in real pipelines
    (use residual_block_forward_nhwc) to avoid these full-tensor transposes."""
    x = jnp.transpose(x_nchw, (0, 2, 3, 1))
    out = residual_block_forward_nhwc(x, params)
    return jnp.transpose(out, (0, 3, 1, 2))


# ----------------------------------------------------------------------------
# Deterministic parameter init + pure-JAX reference
# ----------------------------------------------------------------------------
def init_params(key, cin, cout):
    ks = jax.random.split(key, 10)
    f32 = jnp.float32
    p = {
        "gn1_w": 1.0 + 0.1 * jax.random.normal(ks[0], (cin,), f32),
        "gn1_b": 0.1 * jax.random.normal(ks[1], (cin,), f32),
        "conv1_w": 0.05 * jax.random.normal(ks[2], (cout, cin, 3, 3), f32),
        "conv1_b": 0.05 * jax.random.normal(ks[3], (cout,), f32),
        "gn2_w": 1.0 + 0.1 * jax.random.normal(ks[4], (cout,), f32),
        "gn2_b": 0.1 * jax.random.normal(ks[5], (cout,), f32),
        "conv2_w": 0.05 * jax.random.normal(ks[6], (cout, cout, 3, 3), f32),
        "conv2_b": 0.05 * jax.random.normal(ks[7], (cout,), f32),
    }
    if cin != cout:
        p["res_w"] = 0.1 * jax.random.normal(ks[8], (cout, cin, 1, 1), f32)
        p["res_b"] = 0.05 * jax.random.normal(ks[9], (cout,), f32)
    return p


def ref_forward(x, params):
    def gn(x, w, b):
        N, C, H, W = x.shape
        xg = x.reshape(N, GROUPS, -1)
        mean = xg.mean(axis=2, keepdims=True)
        var = xg.var(axis=2, keepdims=True)
        xn = ((xg - mean) / jnp.sqrt(var + EPS)).reshape(N, C, H, W)
        return xn * w[None, :, None, None] + b[None, :, None, None]

    def silu(x):
        return x * jax.nn.sigmoid(x)

    def conv(x, w, b, pad):
        out = jax.lax.conv_general_dilated(
            x, w, (1, 1), [(pad, pad), (pad, pad)],
            dimension_numbers=("NCHW", "OIHW", "NCHW"))
        return out + b[None, :, None, None]

    res = x
    h = silu(gn(x, params["gn1_w"], params["gn1_b"]))
    h = conv(h, params["conv1_w"], params["conv1_b"], 1)
    h = silu(gn(h, params["gn2_w"], params["gn2_b"]))
    h = conv(h, params["conv2_w"], params["conv2_b"], 1)
    if "res_w" in params:
        res = conv(res, params["res_w"], params["res_b"], 0)
    return h + res


if __name__ == "__main__":
    key = jax.random.PRNGKey(0)
    kx1, kp1, kx2, kp2 = jax.random.split(key, 4)

    # Case 1: Cin != Cout -> fused 1x1-projection residual path.
    N, Cin, Cout, H, W = 2, 32, 64, 16, 16
    x1 = jax.random.normal(kx1, (N, Cin, H, W), jnp.float32)
    p1 = init_params(kp1, Cin, Cout)
    out1 = jax.block_until_ready(residual_block_forward(x1, p1))
    assert out1.shape == (N, Cout, H, W)
    ref1 = ref_forward(x1, p1)
    err1 = float(jnp.max(jnp.abs(out1 - ref1)))
    assert jnp.allclose(out1, ref1, atol=5e-2, rtol=5e-2), f"max_err={err1}"

    # Case 2: Cin == Cout -> fused identity residual path.
    x2 = jax.random.normal(kx2, (N, Cin, H, W), jnp.float32)
    p2 = init_params(kp2, Cin, Cin)
    out2 = jax.block_until_ready(residual_block_forward(x2, p2))
    assert out2.shape == (N, Cin, H, W)
    ref2 = ref_forward(x2, p2)
    err2 = float(jnp.max(jnp.abs(out2 - ref2)))
    assert jnp.allclose(out2, ref2, atol=5e-2, rtol=5e-2), f"max_err={err2}"

    print("KERNEL_OK")
</pallas_src>

<mosaic_0001>
module attributes {stable_mosaic.version = 11 : i64} {
  func.func @_gn_partial_kernel(%arg0: i32, %arg1: i32, %arg2: memref<1x8x16x32xf32, #tpu.memory_space<vmem>>, %arg3: memref<1x1x1x32xf32, #tpu.memory_space<vmem>>, %arg4: memref<1x1x1x32xf32, #tpu.memory_space<vmem>>) attributes {dimension_semantics = [#tpu.dimension_semantics<parallel>, #tpu.dimension_semantics<parallel>], iteration_bounds = array<i64: 2, 2>, scalar_prefetch = 0 : i64, scratch_operands = 0 : i64, tpu.core_type = #tpu.core_type<tc>, window_params = [{transform_indices = @transform_0, window_bounds = array<i64: 1, 8, 16, 32>}, {transform_indices = @transform_1, window_bounds = array<i64: 1, 1, 1, 32>}, {transform_indices = @transform_2, window_bounds = array<i64: 1, 1, 1, 32>}]} {
    %c0 = arith.constant 0 : index
    %c0_0 = arith.constant 0 : index
    %c0_1 = arith.constant 0 : index
    %c0_2 = arith.constant 0 : index
    %0 = vector.load %arg2[%c0, %c0_0, %c0_1, %c0_2] : memref<1x8x16x32xf32, #tpu.memory_space<vmem>>, vector<1x8x16x32xf32>
    %1 = vector.shape_cast %0 : vector<1x8x16x32xf32> to vector<8x16x32xf32>
    %2 = vector.shape_cast %1 : vector<8x16x32xf32> to vector<128x32xf32>
    %cst = arith.constant dense<0.000000e+00> : vector<32xf32>
    %3 = vector.multi_reduction <add>, %2, %cst [0] : vector<128x32xf32> to vector<32xf32>
    %4 = vector.shape_cast %3 : vector<32xf32> to vector<1x32xf32>
    %c0_3 = arith.constant 0 : index
    %c0_4 = arith.constant 0 : index
    %c0_5 = arith.constant 0 : index
    %c0_6 = arith.constant 0 : index
    %5 = vector.load %arg3[%c0_3, %c0_4, %c0_5, %c0_6] : memref<1x1x1x32xf32, #tpu.memory_space<vmem>>, vector<1x1x1x32xf32>
    %6 = vector.shape_cast %5 : vector<1x1x1x32xf32> to vector<1x32xf32>
    %7 = vector.shape_cast %4 : vector<1x32xf32> to vector<1x1x1x32xf32>
    tpu.vector_store %arg3[%c0_3, %c0_4, %c0_5, %c0_6], %7 {strides = array<i32>} : memref<1x1x1x32xf32, #tpu.memory_space<vmem>>, vector<1x1x1x32xf32>,
    %8 = arith.mulf %2, %2 : vector<128x32xf32>
    %cst_7 = arith.constant dense<0.000000e+00> : vector<32xf32>
    %9 = vector.multi_reduction <add>, %8, %cst_7 [0] : vector<128x32xf32> to vector<32xf32>
    %10 = vector.shape_cast %9 : vector<32xf32> to vector<1x32xf32>
    %c0_8 = arith.constant 0 : index
    %c0_9 = arith.constant 0 : index
    %c0_10 = arith.constant 0 : index
    %c0_11 = arith.constant 0 : index
    %11 = vector.load %arg4[%c0_8, %c0_9, %c0_10, %c0_11] : memref<1x1x1x32xf32, #tpu.memory_space<vmem>>, vector<1x1x1x32xf32>
    %12 = vector.shape_cast %11 : vector<1x1x1x32xf32> to vector<1x32xf32>
    %13 = vector.shape_cast %10 : vector<1x32xf32> to vector<1x1x1x32xf32>
    tpu.vector_store %arg4[%c0_8, %c0_9, %c0_10, %c0_11], %13 {strides = array<i32>} : memref<1x1x1x32xf32, #tpu.memory_space<vmem>>, vector<1x1x1x32xf32>,
    return
  }
  func.func @transform_0(%arg0: i32, %arg1: i32) -> (i32, i32, i32, i32) {
    %c0_i32 = arith.constant 0 : i32
    %c0_i32_0 = arith.constant 0 : i32
    %c0_i32_1 = arith.constant 0 : i32
    return %arg0, %arg1, %c0_i32, %c0_i32_0 : i32, i32, i32, i32
  }
  func.func @transform_1(%arg0: i32, %arg1: i32) -> (i32, i32, i32, i32) {
    %c0_i32 = arith.constant 0 : i32
    %c0_i32_0 = arith.constant 0 : i32
    %c0_i32_1 = arith.constant 0 : i32
    return %arg0, %arg1, %c0_i32, %c0_i32_0 : i32, i32, i32, i32
  }
  func.func @transform_2(%arg0: i32, %arg1: i32) -> (i32, i32, i32, i32) {
    %c0_i32 = arith.constant 0 : i32
    %c0_i32_0 = arith.constant 0 : i32
    %c0_i32_1 = arith.constant 0 : i32
    return %arg0, %arg1, %c0_i32, %c0_i32_0 : i32, i32, i32, i32
  }
}

</mosaic_0001>

<bundles_post_ra>
// kernel: tpu_custom_call.1
= control target key start
LH: loop header
LB: loop body
LE: loop exit
PB: predicated region body
PF: predicated region fallthrough
CT: control target
= control target key end

     0   :  { %8 = vsyncpa [#allocation3], 0  ;;  %s1017_s0 = inlined_call_operand.hbm [shape: f32[2,16,16,32], index: 0, kind: input, shape index: {}]   ;;  %s1018_s1 = inlined_call_operand.hbm [shape: f32[2,2,1,32], index: 1, kind: output, shape index: {0}]   ;;  %s1019_s2 = inlined_call_operand.hbm [shape: f32[2,2,1,32], index: 2, kind: output, shape index: {1}]  }
   0x1   :  { %10 = vsyncpa [#allocation3 + $0x1], 0 }
   0x2   :  { %11 = vsyncpa [#allocation4], 0 }
   0x3   :  { %13 = vsyncpa [#allocation4 + $0x1], 0 }
   0x4   :  { %14 = vsyncpa [#allocation7], 0 }
   0x5   :  { %16 = vsyncpa [#allocation7 + $0x1], 0  ;;  %s734_s9 = smov 0   ;;  %s736_s10 = smov 0  }
   0x6   :  { %s738_s11 = smov 0   ;;  %s740_s12 = smov 0  }
   0x7   :  { %s742_s13 = smov 0   ;;  %s744_s14 = smov 0  }
   0x8   :  { %s746_s15 = smov 0   ;;  %s748_s16 = smov 0  }
   0x9 LB: > { %s449_s17 = sadd.s32 4294967295, %s712_s16   ;;  %s450_s18 = sadd.s32 4294967294, %s712_s16   ;;  %s712_s16 = sphi %s748_s16, %s22_s16   ;;  %s708_s15 = sphi %s746_s15, %s1034_s15   ;;  %s704_s14 = sphi %s744_s14, %s1033_s14   ;;  %s700_s13 = sphi %s742_s13, %s1032_s13   ;;  %s696_s12 = sphi %s740_s12, %s1031_s12   ;;  %s692_s11 = sphi %s738_s11, %s1030_s11   ;;  %s688_s10 = sphi %s736_s10, %s1029_s10   ;;  %s684_s9 = sphi %s734_s9, %s1028_s9  }
   0xa   : > { %s31_s19 = sadd.s32 1, %s704_s14  ;;  %s34_s20 = sadd.s32 1, %s708_s15 }
   0xb   : > { %p32_p0 = scmp.ge.s32.totalorder %s31_s19, 2  ;;  %s43_s21 = sadd.s32 1, %s692_s11 }
   0xc   : > { %p50_p1 = scmp.ne.s32.totalorder %s692_s11, %s688_s10  ;;  %p51_p2 = scmp.eq.s32.totalorder %s712_s16, 0 }
   0xd   : > { %s1036_s19 = smov (%p32_p0, %s31_s19), 0  ;;  %s1038_s20 = smov (!%p32_p0, %s34_s20), %s708_s15 }
   0xe   : > { %s39_s22 = ssub.s32 %s704_s14, %s1036_s19  ;;  %p787_p3 = por %p51_p2, %p50_p1 }
   0xf   : > { %p36_p4 = scmp.ge.s32.totalorder %s1038_s20, 2  ;;  %p56_p5 = scmp.ne.s32.totalorder %s688_s10, %s684_s9 }
  0x10   : > { %p57_p6 = scmp.eq.s32.totalorder %s449_s17, 0  ;;  %p82_p7 = scmp.eq.s32.totalorder %s449_s17, 3 }
  0x11   : > { %s1040_s20 = smov (%p36_p4, %s1038_s20), 0  ;;  %p88_p10 = scmp.eq.s32.totalorder %s450_s18, 3 }
  0x12   : > { %p795_p8 = por %p57_p6, %p56_p5  ;;  %p799_p9 = por %p82_p7, %p50_p1 }
  0x13   : > { %s38_s26 = ssub.s32 %s708_s15, %s1040_s20  ;;  %p805_p12 = por %p88_p10, %p56_p5 }
  0x14   : > { %s1023_s25 = scalar_select %p799_p9, 1, 0 }
  0x15   : > { %s40_s27 = sor.u32 %s39_s22, %s38_s26  ;;  %p484_p13 = scmp.lt.s32.totalorder %s712_s16, 4 }
  0x16   : > { %p41_p11 = scmp.eq.s32.totalorder %s40_s27, 0  ;;  %s136_s29 = sand.u32 1, %s692_s11  }
  0x17   : > { %s1024_s28 = scalar_select %p805_p12, 1, 0 }
  0x18   : > { %s812_s30 = scalar_select %p41_p11, %s692_s11, %s43_s21  }
  0x19   : > { %s453_s3 = sshll.u32 %s136_s29, 7  ;;  %s466_s4 = sshll.u32 %s704_s14, 4 }
  0x1a   : > { %s456_s5 = sshll.u32 %s708_s15, 5  ;;  %s140_s6 = scalar_lea.vmem [#allocation2], %s453_s3 }
  0x1b   : > { %s150_s7 = sshll.u32 %s140_s6, 4  ;;  %s147_s8 = sadd.s32 %s466_s4, %s456_s5  ;;  %s816_s7 = int_to_ptr.vmem [resolvable:$true] %s150_s7 }
  0x1c   : > { %s457_s17 = sshll.u32 %s147_s8, 7  ;;  %p820_p0 = pnand %p484_p13, %p787_p3 }
  0x1d   : > { %s827_s21 = scalar_lea.hbm %s1017_s0, %s457_s17  ;;  %s829_s27 = scalar_lea.sflag [#allocation3], %s136_s29 }
  0x1e   : > { %s552_s3 = scalar_lea.hbm %s827_s21, 2048  ;;  %p554_p2 = pneg %p820_p0 }
  0x1f   : > { %p553_p1 = scmp.ne.s32.totalorder %s827_s21, %s552_s3  ;;  %s557_s5 = scalar_lea.hbm %s1017_s0, 8192 }
  0x20   : > { %p558_p5 = scmp.lt.u32.totalorder %s827_s21, %s1017_s0  ;;  %p559_p6 = scmp.lt.u32.totalorder %s557_s5, %s552_s3 }
  0x21   : > { %p555_p3 = pnand %p554_p2, %p553_p1  ;;  %p561_p10 = scmp.lt.u32.totalorder %s552_s3, %s827_s21 }
  0x22   : > { %p560_p7 = por %p559_p6, %p558_p5 }
  0x23   : > { %p556_p4 = pneg %p555_p3 }
  0x24   : > { %p562_p11 = por %p561_p10, %p560_p7 }
  0x26   : > { %p563_p13 = pnand %p562_p11, %p556_p4 }
  0x28   : > { %566 = shalt.err (!%p563_p13)
}
  0x29   : > { %s567_s29 = scalar_lea.vmem %s816_s7, 2048  ;;  %s714_s17 = smov [#allocation2]  }
  0x2a   : > { %p568_p1 = scmp.ne.s32.totalorder %s816_s7, %s567_s29  ;;  %s572_s22 = sshll.u32 %s714_s17, 4  ;;  %s573_s22 = int_to_ptr.vmem [resolvable:$false] %s572_s22 }
  0x2b   : > { %s574_s26 = scalar_lea.vmem %s573_s22, 4096  ;;  %p575_p9 = scmp.lt.s32.totalorder %s816_s7, %s573_s22 }
  0x2c   : > { %p570_p3 = pnand %p568_p1, %p554_p2  ;;  %p576_p5 = scmp.lt.s32.totalorder %s574_s26, %s567_s29 }
  0x2e   : > { %p571_p12 = pneg %p570_p3  ;;  %p577_p6 = por %p576_p5, %p575_p9 }
  0x30   : > { %p578_p7 = pnand %p577_p6, %p571_p12 }
  0x32   : > { %581 = shalt.err (!%p578_p7)
}
  0x33   : > { %s715_s3 = smov 128   ;;  %s716_s23 = smov 8  }
  0x34   : > { %476 = dma.hbm_to_vmem [thread:$0]  (!%p820_p0), %s827_s21, 2048, %s816_s7, %s829_s27, %s715_s3, %s715_s3, %s716_s23  }
  0x35   : > { %p458_p2 = scmp.ge.s32.totalorder %s712_s16, 1  ;;  %p158_p4 = scmp.lt.s32.totalorder %s712_s16, 5 }
  0x37   : > { %p159_p10 = pnand %p458_p2, %p158_p4 }
  0x38   : > { %s860_s4 = sand.u32 (!%p159_p10), 1, %s688_s10  }
  0x39   : > { %162 = sbr.rel (%p159_p10) target bundleno = 147 (0x93), region = 24  ;;  %s459_s5 = sshll.u32 (!%p159_p10), %s860_s4, 7 }
  0x3a   : > { %s165_s6 = scalar_lea.sflag (!%p159_p10), [#allocation3], %s860_s4  ;;  %s864_s8 = scalar_lea.vmem (!%p159_p10), [#allocation2], %s459_s5 }
  0x40   : > { %671 = dma.done.wait (%p795_p8), %s165_s6, 2048  }
  0x41   : > { %673 = vsyncadd (%p795_p8), %s165_s6, 4294965248  ;;  %vm209_vm0 = vcmask 261120   ;;  %v193_v0 = vld [vmem:[%s864_s8] sm:$0xff]  ;;  %v194_v1 = vld [vmem:[%s864_s8 + $0x8] sm:$0xff]  ;;  %s460_s24 = sshll.u32 %s700_s13, 1  ;;  %s185_s18 = scalar_lea.vmem [#allocation5], %s860_s4 }
  0x42   : > { %v195_v2 = vld [vmem:[%s864_s8 + $0x10] sm:$0xff]  ;;  %v210_v3 = vsel %vm209_vm0, %v193_v0, 0.0  ;;  %v211_v4 = vsel %vm209_vm0, %v194_v1, 0.0  ;;  %v196_v6 = vld [vmem:[%s864_s8 + $0x18] sm:$0xff]  ;;  %v197_v9 = vld [vmem:[%s864_s8 + $0x20] sm:$0xff]  ;;  %v249_v14 = vmul.f32 %v193_v0, %v193_v0  ;;  %v250_v15 = vmul.f32 %v194_v1, %v194_v1  ;;  %s920_s7 = sadd.s32 %s696_s12, %s460_s24  ;;  %s322_s21 = sshll.u32 %s185_s18, 4  ;;  %s924_s21 = int_to_ptr.vmem [resolvable:$true] %s322_s21 }
  0x43   : > { %v213_v5 = vsel %vm209_vm0, %v195_v2, 0.0  ;;  %v212_v7 = vadd.f32 %v211_v4, %v210_v3  ;;  %v215_v8 = vsel %vm209_vm0, %v196_v6, 0.0  ;;  %v217_v11 = vsel %vm209_vm0, %v197_v9, 0.0  ;;  %v198_v12 = vld [vmem:[%s864_s8 + $0x28] sm:$0xff]  ;;  %v199_v18 = vld [vmem:[%s864_s8 + $0x30] sm:$0xff]  ;;  %v200_v23 = vld [vmem:[%s864_s8 + $0x38] sm:$0xff] }
  0x44   : > { %v251_v16 = vmul.f32 %v195_v2, %v195_v2  ;;  %v219_v17 = vsel %vm209_vm0, %v198_v12, 0.0  ;;  %v252_v20 = vmul.f32 %v196_v6, %v196_v6  ;;  %v221_v21 = vsel %vm209_vm0, %v199_v18, 0.0  ;;  %v201_v30 = vld [vmem:[%s864_s8 + $0x40] sm:$0xff]  ;;  %v202_v36 = vld [vmem:[%s864_s8 + $0x48] sm:$0xff]  ;;  %v203_v42 = vld [vmem:[%s864_s8 + $0x50] sm:$0xff]  ;;  %s461_s27 = sshll.u32 %s920_s7, 4 }
  0x45   : > { %v214_v10 = vadd.f32 %v213_v5, %v212_v7  ;;  %v253_v22 = vmul.f32 %v197_v9, %v197_v9  ;;  %v265_v25 = vsel %vm209_vm0, %v249_v14, 0.0  ;;  %v266_v26 = vsel %vm209_vm0, %v250_v15, 0.0  ;;  %v204_v48 = vld [vmem:[%s864_s8 + $0x58] sm:$0xff]  ;;  %v205_v54 = vld [vmem:[%s864_s8 + $0x60] sm:$0xff]  ;;  %v206_v60 = vld [vmem:[%s864_s8 + $0x68] sm:$0xff]  ;;  %s931_s29 = scalar_lea.hbm %s1018_s1, %s461_s27  ;;  %s304_s17 = scalar_lea.sflag [#allocation4], %s860_s4 }
  0x46   : > { %v268_v27 = vsel %vm209_vm0, %v251_v16, 0.0  ;;  %v223_v28 = vsel %vm209_vm0, %v200_v23, 0.0  ;;  %v267_v29 = vadd.f32 %v266_v26, %v265_v25  ;;  %v254_v32 = vmul.f32 %v198_v12, %v198_v12  ;;  %v207_v2 = vld [vmem:[%s864_s8 + $0x70] sm:$0xff]  ;;  %s582_s22 = scalar_lea.vmem %s924_s21, 16  ;;  %p1026_p9 = scmp.ne.s32.totalorder %s1023_s25, 0 }
  0x47   : > { %v216_v13 = vadd.f32 %v215_v8, %v214_v10  ;;  %v270_v33 = vsel %vm209_vm0, %v252_v20, 0.0  ;;  %v225_v34 = vsel %vm209_vm0, %v201_v30, 0.0  ;;  %v255_v38 = vmul.f32 %v199_v18, %v199_v18  ;;  %v208_v8 = vld [vmem:[%s864_s8 + $0x78] sm:$0xff]  ;;  %p583_p8 = scmp.ne.s32.totalorder %s924_s21, %s582_s22  ;;  %s717_s26 = smov [#allocation5]  }
  0x48   : > { %v269_v35 = vadd.f32 %v268_v27, %v267_v29  ;;  %v272_v39 = vsel %vm209_vm0, %v253_v22, 0.0  ;;  %v227_v40 = vsel %vm209_vm0, %v202_v36, 0.0  ;;  %v256_v44 = vmul.f32 %v200_v23, %v200_v23  ;;  %s586_s3 = sshll.u32 %s717_s26, 4  ;;  %s587_s3 = int_to_ptr.vmem [resolvable:$false] %s586_s3 }
  0x49   : > { %v218_v19 = vadd.f32 %v217_v11, %v216_v13  ;;  %v274_v45 = vsel %vm209_vm0, %v254_v32, 0.0  ;;  %v229_v46 = vsel %vm209_vm0, %v203_v42, 0.0  ;;  %v257_v50 = vmul.f32 %v201_v30, %v201_v30  ;;  %p584_p12 = pnand %p583_p8, %p1026_p9  ;;  %s588_s23 = scalar_lea.vmem %s587_s3, 32 }
  0x4a   : > { %v271_v41 = vadd.f32 %v270_v33, %v269_v35  ;;  %v276_v51 = vsel %vm209_vm0, %v255_v38, 0.0  ;;  %v231_v52 = vsel %vm209_vm0, %v204_v48, 0.0  ;;  %v258_v56 = vmul.f32 %v202_v36, %v202_v36  ;;  %p589_p11 = scmp.lt.s32.totalorder %s924_s21, %s587_s3  ;;  %p590_p13 = scmp.lt.s32.totalorder %s588_s23, %s582_s22 }
  0x4b   : > { %v220_v24 = vadd.f32 %v219_v17, %v218_v19  ;;  %v278_v57 = vsel %vm209_vm0, %v256_v44, 0.0  ;;  %v233_v58 = vsel %vm209_vm0, %v205_v54, 0.0  ;;  %v259_v62 = vmul.f32 %v203_v42, %v203_v42  ;;  %p585_p0 = pneg %p584_p12 }
  0x4c   : > { %v273_v47 = vadd.f32 %v272_v39, %v271_v41  ;;  %v280_v63 = vsel %vm209_vm0, %v257_v50, 0.0  ;;  %v235_v0 = vsel %vm209_vm0, %v206_v60, 0.0  ;;  %v260_v4 = vmul.f32 %v204_v48, %v204_v48  ;;  %p591_p1 = por %p590_p13, %p589_p11 }
  0x4d   : > { %v222_v31 = vadd.f32 %v221_v21, %v220_v24  ;;  %v282_v5 = vsel %vm209_vm0, %v258_v56, 0.0  ;;  %v237_v6 = vsel %vm209_vm0, %v207_v2, 0.0  ;;  %v261_v10 = vmul.f32 %v205_v54, %v205_v54 }
  0x4e   : > { %v275_v53 = vadd.f32 %v274_v45, %v273_v47  ;;  %v284_v11 = vsel %vm209_vm0, %v259_v62, 0.0  ;;  %v239_v12 = vsel %vm209_vm0, %v208_v8, 0.0  ;;  %v262_v15 = vmul.f32 %v206_v60, %v206_v60  ;;  %p592_p3 = pnand %p591_p1, %p585_p0 }
  0x4f   : > { %v224_v37 = vadd.f32 %v223_v28, %v222_v31  ;;  %v286_v16 = vsel %vm209_vm0, %v260_v4, 0.0  ;;  %v263_v19 = vmul.f32 %v207_v2, %v207_v2  ;;  %v288_v20 = vsel %vm209_vm0, %v261_v10, 0.0 }
  0x50   : > { %v277_v59 = vadd.f32 %v276_v51, %v275_v53  ;;  %v264_v23 = vmul.f32 %v208_v8, %v208_v8  ;;  %v290_v24 = vsel %vm209_vm0, %v262_v15, 0.0  ;;  %vm247_vm1 = vcmask 253952  }
  0x51   : > { %v226_v43 = vadd.f32 %v225_v34, %v224_v37  ;;  %v292_v27 = vsel %vm209_vm0, %v263_v19, 0.0 }
  0x52   : > { %v279_v1 = vadd.f32 %v278_v57, %v277_v59  ;;  %v294_v30 = vsel %vm209_vm0, %v264_v23, 0.0 }
  0x53   : > { %v228_v49 = vadd.f32 %v227_v40, %v226_v43 }
  0x54   : > { %v281_v7 = vadd.f32 %v280_v63, %v279_v1 }
  0x55   : > { %v230_v55 = vadd.f32 %v229_v46, %v228_v49 }
  0x56   : > { %v283_v13 = vadd.f32 %v282_v5, %v281_v7 }
  0x57   : > { %v232_v61 = vadd.f32 %v231_v52, %v230_v55 }
  0x58   : > { %v285_v17 = vadd.f32 %v284_v11, %v283_v13 }
  0x59   : > { %v234_v3 = vadd.f32 %v233_v58, %v232_v61 }
  0x5a   : > { %v287_v21 = vadd.f32 %v286_v16, %v285_v17 }
  0x5b   : > { %v236_v9 = vadd.f32 %v235_v0, %v234_v3 }
  0x5c   : > { %v289_v25 = vadd.f32 %v288_v20, %v287_v21 }
  0x5d   : > { %v238_v14 = vadd.f32 %v237_v6, %v236_v9 }
  0x5e   : > { %v291_v28 = vadd.f32 %v290_v24, %v289_v25 }
  0x5f   : > { %v240_v18 = vadd.f32 %v239_v12, %v238_v14 }
  0x60   : > { %v293_v31 = vadd.f32 %v292_v27, %v291_v28 }
  0x61   : > { %v241_v22 = vrot.slane %v240_v18, 4 }
  0x62   : > { %v295_v33 = vadd.f32 %v294_v30, %v293_v31 }
  0x63   : > { %v242_v26 = vadd.f32 %v241_v22, %v240_v18 }
  0x64   : > { %v296_v35 = vrot.slane %v295_v33, 4 }
  0x65   : > { %v243_v29 = vrot.slane %v242_v26, 2 }
  0x66   : > { %v297_v37 = vadd.f32 %v296_v35, %v295_v33 }
  0x67   : > { %v244_v32 = vadd.f32 %v243_v29, %v242_v26 }
  0x68   : > { %v298_v38 = vrot.slane %v297_v37, 2 }
  0x69   : > { %v245_v34 = vrot.slane %v244_v32, 1 }
  0x6b   : > { %v246_v36 = vadd.f32 %v245_v34, %v244_v32 }
  0x6d   : > { %248 = vst.msk [vmem:[%s185_s18] sm:$0x1] %vm247_vm1, %v246_v36 }
  0x6e   : > { %595 = shalt.err (!%p592_p3)
}
  0x6f   : > { %s596_s5 = scalar_lea.hbm %s931_s29, 16  ;;  %s600_s24 = scalar_lea.hbm %s1018_s1, 64 }
  0x70   : > { %p597_p5 = scmp.ne.s32.totalorder %s931_s29, %s596_s5  ;;  %p601_p2 = scmp.lt.u32.totalorder %s931_s29, %s1018_s1 }
  0x71   : > { %p602_p4 = scmp.lt.u32.totalorder %s600_s24, %s596_s5  ;;  %p604_p8 = scmp.lt.u32.totalorder %s596_s5, %s931_s29 }
  0x72   : > { %p598_p6 = pnand %p597_p5, %p1026_p9 }
  0x73   : > { %p603_p10 = por %p602_p4, %p601_p2 }
  0x74   : > { %p599_p7 = pneg %p598_p6 }
  0x75   : > { %p605_p12 = por %p604_p8, %p603_p10 }
  0x77   : > { %p606_p0 = pnand %p605_p12, %p599_p7 }
  0x79   : > { %609 = shalt.err (!%p606_p0)
}
  0x7a   : > { %469 = dma.vmem_to_hbm [thread:$0]  (%p1026_p9), %s924_s21, 16, %s931_s29, %s304_s17   ;;  %v299_v39 = vadd.f32 %v298_v38, %v297_v37 }
  0x7b   : > { %s191_s13 = scalar_lea.vmem [#allocation6], %s860_s4  ;;  %s964_s23 = scalar_lea.hbm %s1019_s2, %s461_s27 }
  0x7c   : > { %s337_s22 = sshll.u32 %s191_s13, 4  ;;  %v300_v40 = vrot.slane %v299_v39, 1  ;;  %s308_s5 = scalar_lea.sflag [#allocation7], %s860_s4  ;;  %s957_s22 = int_to_ptr.vmem [resolvable:$true] %s337_s22 }
  0x7d   : > { %s610_s21 = scalar_lea.vmem %s957_s22, 16  ;;  %s718_s29 = smov [#allocation6]  }
  0x7e   : > { %v301_v41 = vadd.f32 %v300_v40, %v299_v39  ;;  %p611_p11 = scmp.ne.s32.totalorder %s957_s22, %s610_s21  ;;  %s614_s17 = sshll.u32 %s718_s29, 4  ;;  %s615_s17 = int_to_ptr.vmem [resolvable:$false] %s614_s17 }
  0x7f   : > { %s616_s6 = scalar_lea.vmem %s615_s17, 32  ;;  %p617_p3 = scmp.lt.s32.totalorder %s957_s22, %s615_s17 }
  0x80   : > { %302 = vst.msk [vmem:[%s191_s13] sm:$0x1] %vm247_vm1, %v301_v41  ;;  %p612_p13 = pnand %p611_p11, %p1026_p9  ;;  %p618_p5 = scmp.lt.s32.totalorder %s616_s6, %s610_s21 }
  0x82   : > { %p613_p1 = pneg %p612_p13  ;;  %p619_p6 = por %p618_p5, %p617_p3 }
  0x84   : > { %p620_p7 = pnand %p619_p6, %p613_p1 }
  0x86   : > { %623 = shalt.err (!%p620_p7)
}
  0x87   : > { %s624_s4 = scalar_lea.hbm %s964_s23, 16  ;;  %s628_s8 = scalar_lea.hbm %s1019_s2, 64 }
  0x88   : > { %p625_p2 = scmp.ne.s32.totalorder %s964_s23, %s624_s4  ;;  %p629_p8 = scmp.lt.u32.totalorder %s964_s23, %s1019_s2 }
  0x89   : > { %p630_p12 = scmp.lt.u32.totalorder %s628_s8, %s624_s4  ;;  %p632_p11 = scmp.lt.u32.totalorder %s624_s4, %s964_s23 }
  0x8a   : > { %p626_p4 = pnand %p625_p2, %p1026_p9 }
  0x8b   : > { %p631_p0 = por %p630_p12, %p629_p8 }
  0x8c   : > { %p627_p10 = pneg %p626_p4 }
  0x8d   : > { %p633_p13 = por %p632_p11, %p631_p0 }
  0x8f   : > { %p634_p1 = pnand %p633_p13, %p627_p10 }
  0x91   : > { %637 = shalt.err (!%p634_p1)
}
  0x92   : > { %470 = dma.vmem_to_hbm [thread:$0]  (%p1026_p9), %s957_s22, 16, %s964_s23, %s308_s5  }
  0x93 PF: > { %p485_p3 = scmp.ge.s32.totalorder %s712_s16, 2  ;;  %s349_s12 = sand.u32 1, %s684_s9  }
  0x94   : > { %p1027_p5 = scmp.ne.s32.totalorder %s1024_s28, 0  ;;  %s350_s13 = scalar_lea.sflag [#allocation4], %s349_s12 }
  0x96   : > { %p478_p6 = pnand %p485_p3, %p1027_p5 }
  0x98   : > { %675 = dma.done.wait (!%p478_p6), %s350_s13, 16  }
  0x99   : > { %677 = vsyncadd (!%p478_p6), %s350_s13, 4294967280  ;;  %s358_s26 = scalar_lea.sflag [#allocation7], %s349_s12 }
  0x9a   : > { %679 = dma.done.wait (!%p478_p6), %s358_s26, 16  }
  0x9b   : > { %681 = vsyncadd (!%p478_p6), %s358_s26, 4294967280  ;;  %s22_s16 = sadd.s32 1, %s712_s16   ;;  %s1028_s9 = smov %s688_s10 }
  0x9c   : > { %p19_p7 = scmp.ge.s32.totalorder %s22_s16, 6   ;;  %s1029_s10 = smov %s692_s11 }
  0x9d   : > { %s1030_s11 = smov %s812_s30  ;;  %s1031_s12 = smov %s704_s14 }
  0x9e   : > { %s1032_s13 = smov %s708_s15  ;;  %s1033_s14 = smov %s1036_s19 }
  0x9f   : > { %s1034_s15 = smov %s1040_s20  ;;  %21 = sbr.rel (!%p19_p7) target bundleno = 9 (0x9), region = 86 }
  0xa6   :  { %362 = vsyncpa [#allocation3], 1 }
  0xa7   :  { %364 = vsyncpa [#allocation3 + $0x1], 1 }
  0xa8   :  { %365 = vsyncpa [#allocation4], 1 }
  0xa9   :  { %367 = vsyncpa [#allocation4 + $0x1], 1 }
  0xaa   :  { %368 = vsyncpa [#allocation7], 1 }
  0xab   :  { %370 = vsyncpa [#allocation7 + $0x1], 1 }

</bundles_post_ra>
